<compile_context>
chip_gen: v7x
topology: tpu7x:2x2x1
jax: 0.10.0
libtpu: 0.0.40
codegen_flags: <defaults>
</compile_context>

<pallas_src>
import jax
import jax.numpy as jnp
from jax.experimental import pallas as pl
from jax.experimental.pallas import tpu as pltpu


def mlp_kernel(x_ref, w1_ref, b1_ref, w2_ref, b2_ref, o_ref, acc_ref):
    """One (batch-tile, k-tile) grid step of fc1 -> ReLU -> (dropout=id) -> fc2."""
    k = pl.program_id(1)

    @pl.when(k == 0)
    def _():
        acc_ref[...] = jnp.zeros_like(acc_ref)

    # fc1 partial product on the MXU: cast the streamed f32 x tile to bf16
    # in-register (free on the VPU), accumulate in f32.
    acc_ref[...] += jnp.dot(x_ref[...].astype(jnp.bfloat16), w1_ref[...],
                            preferred_element_type=jnp.float32)

    @pl.when(k == pl.num_programs(1) - 1)
    def _():
        # bias + ReLU in f32 on the VPU (native on v5e as well).
        h = jnp.maximum(acc_ref[...] + b1_ref[...], 0.0)
        # dropout (inference) -> identity
        # fc2 on the MXU; downcast activations only for the dot.
        out = jnp.dot(h.astype(w2_ref.dtype), w2_ref[...],
                      preferred_element_type=jnp.float32)
        o_ref[...] = (out + b2_ref[...]).astype(o_ref.dtype)


def _round_up(n, m):
    return (n + m - 1) // m * m


def _device_vmem_bytes():
    try:
        return int(pltpu.get_tpu_info().vmem_capacity_bytes)
    except Exception:
        return 64 * 1024 * 1024  # conservative default: fits v5e/v6e/v7x


def text_classifier_forward(x, w1, b1, w2, b2, *, block_b=None, k_block=None,
                            training=False):
    """Forward pass of TextClassifier (inference).

    x : (B, In) float32
    w1: (In, H)  -- fc1 weight stored pre-transposed (PyTorch stores (H, In))
    b1: (H,) or (1, H)
    w2: (H, C)   -- fc2 weight stored pre-transposed
    b2: (C,) or (1, C)
    k_block: optional explicit K-tile (multiple of 128) to force K-tiling.
    returns (B, C) float32 logits (bf16 matmuls, f32 accumulation).
    """
    if training:
        # TODO(synk): training-mode dropout via pltpu.prng_seed + prng_random_bits.
        raise NotImplementedError("training-mode dropout is not implemented")

    B, In = x.shape
    H = w1.shape[1]
    C = w2.shape[1]

    vmem_cap = _device_vmem_bytes()

    # Lane-aligned output dims -> lane-dense (unmasked) stores.
    H_p = _round_up(H, 128)
    C_p = _round_up(C, 128)

    # ---- batch tile: multiple of 16 (bf16 sublane packing), derived from the
    # actual batch (remainder mitigation), >=2 tiles when big enough so the
    # "parallel" axis actually shards across v7x's two TensorCores.
    if block_b is None:
        block_b = 256 if vmem_cap <= 64 * 1024 * 1024 else 512
    nb_want = 2 if B >= 32 else 1
    nb_want = max(nb_want, -(-B // block_b))            # ceil(B / block_b)
    TB = min(_round_up(-(-B // nb_want), 16), _round_up(B, 16))
    B_p = _round_up(B, TB)
    nb = B_p // TB

    # ---- K (= input_size) handling: keep w1 fully VMEM-resident unless it
    # would eat too much of VMEM, in which case stream it in 128-multiple tiles.
    if k_block is None and In * H_p * 2 > vmem_cap // 4:
        # Largest 128-multiple tile whose double-buffered bf16 w1 slab stays
        # under ~1/4 of device VMEM.
        k_block = max(128, ((vmem_cap // 4) // (2 * H_p * 2)) // 128 * 128)
    if k_block is not None:
        In_blk = int(k_block)
        assert In_blk % 128 == 0, "k_block must be a multiple of 128"
        In_p = _round_up(In, In_blk)
        nk = In_p // In_blk
    else:
        In_blk, In_p, nk = In, In, 1

    # ---- operand prep. x stays f32 (cast to bf16 in-kernel); zero padding
    # contributes exactly zero to every output element we keep. The weight
    # pad/cast is a one-time XLA op off the per-step streaming path (cache it
    # caller-side / under jit for repeated forwards).
    if B_p != B or In_p != In:
        xp = jnp.pad(x, ((0, B_p - B), (0, In_p - In)))
    else:
        xp = x
    xp = xp.astype(jnp.float32)
    w1b = jnp.pad(w1, ((0, In_p - In), (0, H_p - H))).astype(jnp.bfloat16)
    w2b = jnp.pad(w2, ((0, H_p - H), (0, C_p - C))).astype(jnp.bfloat16)
    b1p = jnp.pad(jnp.asarray(b1, jnp.float32).reshape(1, -1),
                  ((0, 0), (0, H_p - H)))
    b2p = jnp.pad(jnp.asarray(b2, jnp.float32).reshape(1, -1),
                  ((0, 0), (0, C_p - C)))

    # ---- BlockSpecs. Constant-index operands are single-buffered (Buffered(1));
    # w1 keeps default double-buffering only when it actually streams along K.
    if nk > 1:
        w1_spec = pl.BlockSpec((In_blk, H_p), lambda i, k: (k, 0))
    else:
        w1_spec = pl.BlockSpec((In_blk, H_p), lambda i, k: (0, 0),
                               pipeline_mode=pl.Buffered(1))
    in_specs = [
        pl.BlockSpec((TB, In_blk), lambda i, k: (i, k)),            # x: streamed
        w1_spec,                                                    # w1
        pl.BlockSpec((1, H_p), lambda i, k: (0, 0),
                     pipeline_mode=pl.Buffered(1)),                 # b1: resident
        pl.BlockSpec((H_p, C_p), lambda i, k: (0, 0),
                     pipeline_mode=pl.Buffered(1)),                 # w2: resident
        pl.BlockSpec((1, C_p), lambda i, k: (0, 0),
                     pipeline_mode=pl.Buffered(1)),                 # b2: resident
    ]
    out_spec = pl.BlockSpec((TB, C_p), lambda i, k: (i, 0))

    # ---- VMEM accounting (matches what Pallas actually allocates) and limit
    # clamped to ~80% of *this device's* VMEM (leaves compiler scratch headroom).
    nbuf_w1 = 2 if nk > 1 else 1
    vmem_est = (2 * TB * In_blk * 4            # x tiles (f32, double-buffered)
                + nbuf_w1 * In_blk * H_p * 2   # w1 (bf16)
                + H_p * C_p * 2                # w2 (bf16, single buffer)
                + 8 * H_p * 4 + 8 * C_p * 4    # biases (f32, sublane-padded)
                + 2 * TB * C_p * 4             # out tiles (f32, double-buffered)
                + TB * H_p * 4)                # f32 accumulator scratch
    vmem_limit = int(min(0.8 * vmem_cap,
                         max(32 * 1024 * 1024, 1.5 * vmem_est)))

    # Advisory cost estimate for XLA's scheduler.
    flops = 2 * B_p * (In_p * H_p + H_p * C_p)
    bytes_accessed = (xp.size * 4 + w1b.size * 2 + w2b.size * 2
                      + b1p.size * 4 + b2p.size * 4 + B_p * C_p * 4)

    out_p = pl.pallas_call(
        mlp_kernel,
        out_shape=jax.ShapeDtypeStruct((B_p, C_p), jnp.float32),
        grid_spec=pltpu.PrefetchScalarGridSpec(
            num_scalar_prefetch=0,
            grid=(nb, nk),
            in_specs=in_specs,
            out_specs=out_spec,
            scratch_shapes=[pltpu.VMEM((TB, H_p), jnp.float32)],
        ),
        compiler_params=pltpu.CompilerParams(
            dimension_semantics=("parallel", "arbitrary"),
            vmem_limit_bytes=vmem_limit,
        ),
        cost_estimate=pl.CostEstimate(
            flops=flops, transcendentals=0, bytes_accessed=bytes_accessed),
    )(xp, w1b, b1p, w2b, b2p)

    return out_p[:B, :C]


def init_params(key, input_size, hidden_size, num_classes, dtype=jnp.float32):
    """Deterministic init mimicking nn.Linear's U(-1/sqrt(fan_in), 1/sqrt(fan_in))."""
    k1, k2, k3, k4 = jax.random.split(key, 4)
    bound1 = 1.0 / (input_size ** 0.5)
    bound2 = 1.0 / (hidden_size ** 0.5)
    # stored as (in, out) so the kernel computes x @ W
    w1 = jax.random.uniform(k1, (input_size, hidden_size), dtype, -bound1, bound1)
    b1 = jax.random.uniform(k2, (1, hidden_size), dtype, -bound1, bound1)
    w2 = jax.random.uniform(k3, (hidden_size, num_classes), dtype, -bound2, bound2)
    b2 = jax.random.uniform(k4, (1, num_classes), dtype, -bound2, bound2)
    return w1, b1, w2, b2


def _reference(x, w1, b1, w2, b2):
    """Plain-JAX reference using the same bf16-matmul / f32-accumulation recipe."""
    h = jnp.maximum(
        jnp.dot(x.astype(jnp.bfloat16), w1.astype(jnp.bfloat16),
                preferred_element_type=jnp.float32) + b1.reshape(1, -1), 0.0)
    return jnp.dot(h.astype(jnp.bfloat16), w2.astype(jnp.bfloat16),
                   preferred_element_type=jnp.float32) + b2.reshape(1, -1)


if __name__ == "__main__":
    # Small shapes consistent with the module: batch=8, input_size=32,
    # hidden_size=32, num_classes=8 (kernel pads/tiles to MXU-aligned shapes).
    batch, input_size, hidden_size, num_classes = 8, 32, 32, 8
    kx, kp = jax.random.split(jax.random.PRNGKey(0))
    x = jax.random.normal(kx, (batch, input_size), jnp.float32)
    w1, b1, w2, b2 = init_params(kp, input_size, hidden_size, num_classes)

    out = jax.block_until_ready(text_classifier_forward(x, w1, b1, w2, b2))
    ref = _reference(x, w1, b1, w2, b2)
    assert out.shape == (batch, num_classes)
    assert jnp.allclose(out, ref, atol=1e-2, rtol=1e-2)

    # Also exercise the K-tiled (streamed-w1, accumulator) path used for large
    # input_size, forced here at a small shape.
    batch2, in2, hid2, cls2 = 8, 256, 64, 8
    kx2, kp2 = jax.random.split(jax.random.PRNGKey(1))
    x2 = jax.random.normal(kx2, (batch2, in2), jnp.float32)
    w1_2, b1_2, w2_2, b2_2 = init_params(kp2, in2, hid2, cls2)
    out2 = jax.block_until_ready(
        text_classifier_forward(x2, w1_2, b1_2, w2_2, b2_2, k_block=128))
    ref2 = _reference(x2, w1_2, b1_2, w2_2, b2_2)
    assert out2.shape == (batch2, cls2)
    assert jnp.allclose(out2, ref2, atol=1e-2, rtol=1e-2)

    print("KERNEL_OK")
</pallas_src>

<mosaic_0001>
module attributes {stable_mosaic.version = 11 : i64} {
  func.func @mlp_kernel(%arg0: i32, %arg1: i32, %arg2: memref<16x32xf32, #tpu.memory_space<vmem>>, %arg3: memref<32x128xbf16, #tpu.memory_space<vmem>>, %arg4: memref<1x128xf32, #tpu.memory_space<vmem>>, %arg5: memref<128x128xbf16, #tpu.memory_space<vmem>>, %arg6: memref<1x128xf32, #tpu.memory_space<vmem>>, %arg7: memref<16x128xf32, #tpu.memory_space<vmem>>, %arg8: memref<16x128xf32, #tpu.memory_space<vmem>>) attributes {dimension_semantics = [#tpu.dimension_semantics<parallel>, #tpu.dimension_semantics<arbitrary>], iteration_bounds = array<i64: 1, 1>, scalar_prefetch = 0 : i64, scratch_operands = 1 : i64, tpu.core_type = #tpu.core_type<tc>, window_params = [{transform_indices = @transform_0, window_bounds = array<i64: 16, 32>}, {pipeline_mode = #tpu.pipeline_mode<synchronous>, transform_indices = @transform_1, window_bounds = array<i64: 32, 128>}, {pipeline_mode = #tpu.pipeline_mode<synchronous>, transform_indices = @transform_2, window_bounds = array<i64: 1, 128>}, {pipeline_mode = #tpu.pipeline_mode<synchronous>, transform_indices = @transform_3, window_bounds = array<i64: 128, 128>}, {pipeline_mode = #tpu.pipeline_mode<synchronous>, transform_indices = @transform_4, window_bounds = array<i64: 1, 128>}, {transform_indices = @transform_5, window_bounds = array<i64: 16, 128>}]} {
    %c0_i32 = arith.constant 0 : i32
    %0 = arith.cmpi eq, %arg1, %c0_i32 : i32
    %1 = arith.extui %0 : i1 to i32
    %c0_i32_0 = arith.constant 0 : i32
    %2 = arith.cmpi ne, %1, %c0_i32_0 : i32
    scf.if %2 {
      %cst_10 = arith.constant 0.000000e+00 : f32
      %13 = vector.broadcast %cst_10 : f32 to vector<16x128xf32>
      %c0_11 = arith.constant 0 : index
      %c0_12 = arith.constant 0 : index
      %14 = vector.load %arg8[%c0_11, %c0_12] : memref<16x128xf32, #tpu.memory_space<vmem>>, vector<16x128xf32>
      tpu.vector_store %arg8[%c0_11, %c0_12], %13 {strides = array<i32>} : memref<16x128xf32, #tpu.memory_space<vmem>>, vector<16x128xf32>,
    } else {
    }
    %c0 = arith.constant 0 : index
    %c0_1 = arith.constant 0 : index
    %3 = vector.load %arg8[%c0, %c0_1] : memref<16x128xf32, #tpu.memory_space<vmem>>, vector<16x128xf32>
    %c0_2 = arith.constant 0 : index
    %c0_3 = arith.constant 0 : index
    %4 = vector.load %arg2[%c0_2, %c0_3] : memref<16x32xf32, #tpu.memory_space<vmem>>, vector<16x32xf32>
    %5 = arith.truncf %4 : vector<16x32xf32> to vector<16x32xbf16>
    %c0_4 = arith.constant 0 : index
    %c0_5 = arith.constant 0 : index
    %6 = vector.load %arg3[%c0_4, %c0_5] : memref<32x128xbf16, #tpu.memory_space<vmem>>, vector<32x128xbf16>
    %cst = arith.constant dense<0.000000e+00> : vector<16x128xf32>
    %7 = tpu.matmul %5, %6, %cst {dimension_numbers = #tpu.dot_dimension_numbers<[1], [0], [0], [1], [0, 0, 1, 1], [], []>} : vector<16x32xbf16>, vector<32x128xbf16>, vector<16x128xf32> -> vector<16x128xf32>
    %8 = arith.addf %3, %7 : vector<16x128xf32>
    %c0_6 = arith.constant 0 : index
    %c0_7 = arith.constant 0 : index
    %9 = vector.load %arg8[%c0_6, %c0_7] : memref<16x128xf32, #tpu.memory_space<vmem>>, vector<16x128xf32>
    tpu.vector_store %arg8[%c0_6, %c0_7], %8 {strides = array<i32>} : memref<16x128xf32, #tpu.memory_space<vmem>>, vector<16x128xf32>,
    %c0_i32_8 = arith.constant 0 : i32
    %10 = arith.cmpi eq, %arg1, %c0_i32_8 : i32
    %11 = arith.extui %10 : i1 to i32
    %c0_i32_9 = arith.constant 0 : i32
    %12 = arith.cmpi ne, %11, %c0_i32_9 : i32
    scf.if %12 {
      %c0_10 = arith.constant 0 : index
      %c0_11 = arith.constant 0 : index
      %13 = vector.load %arg8[%c0_10, %c0_11] : memref<16x128xf32, #tpu.memory_space<vmem>>, vector<16x128xf32>
      %c0_12 = arith.constant 0 : index
      %c0_13 = arith.constant 0 : index
      %14 = vector.load %arg4[%c0_12, %c0_13] : memref<1x128xf32, #tpu.memory_space<vmem>>, vector<1x128xf32>
      %15 = vector.broadcast %14 : vector<1x128xf32> to vector<16x128xf32>
      %16 = arith.addf %13, %15 : vector<16x128xf32>
      %cst_14 = arith.constant 0.000000e+00 : f32
      %17 = vector.broadcast %cst_14 : f32 to vector<16x128xf32>
      %18 = arith.maximumf %16, %17 : vector<16x128xf32>
      %19 = arith.truncf %18 : vector<16x128xf32> to vector<16x128xbf16>
      %c0_15 = arith.constant 0 : index
      %c0_16 = arith.constant 0 : index
      %20 = vector.load %arg5[%c0_15, %c0_16] : memref<128x128xbf16, #tpu.memory_space<vmem>>, vector<128x128xbf16>
      %cst_17 = arith.constant dense<0.000000e+00> : vector<16x128xf32>
      %21 = tpu.matmul %19, %20, %cst_17 {dimension_numbers = #tpu.dot_dimension_numbers<[1], [0], [0], [1], [0, 0, 1, 1], [], []>} : vector<16x128xbf16>, vector<128x128xbf16>, vector<16x128xf32> -> vector<16x128xf32>
      %c0_18 = arith.constant 0 : index
      %c0_19 = arith.constant 0 : index
      %22 = vector.load %arg6[%c0_18, %c0_19] : memref<1x128xf32, #tpu.memory_space<vmem>>, vector<1x128xf32>
      %23 = vector.broadcast %22 : vector<1x128xf32> to vector<16x128xf32>
      %24 = arith.addf %21, %23 : vector<16x128xf32>
      %c0_20 = arith.constant 0 : index
      %c0_21 = arith.constant 0 : index
      %25 = vector.load %arg7[%c0_20, %c0_21] : memref<16x128xf32, #tpu.memory_space<vmem>>, vector<16x128xf32>
      tpu.vector_store %arg7[%c0_20, %c0_21], %24 {strides = array<i32>} : memref<16x128xf32, #tpu.memory_space<vmem>>, vector<16x128xf32>,
    } else {
    }
    return
  }
  func.func @transform_0(%arg0: i32, %arg1: i32) -> (i32, i32) {
    %c0_i32 = arith.constant 0 : i32
    return %arg0, %arg1 : i32, i32
  }
  func.func @transform_1(%arg0: i32, %arg1: i32) -> (i32, i32) {
    %c0_i32 = arith.constant 0 : i32
    %c0_i32_0 = arith.constant 0 : i32
    %c0_i32_1 = arith.constant 0 : i32
    return %c0_i32, %c0_i32_0 : i32, i32
  }
  func.func @transform_2(%arg0: i32, %arg1: i32) -> (i32, i32) {
    %c0_i32 = arith.constant 0 : i32
    %c0_i32_0 = arith.constant 0 : i32
    %c0_i32_1 = arith.constant 0 : i32
    return %c0_i32, %c0_i32_0 : i32, i32
  }
  func.func @transform_3(%arg0: i32, %arg1: i32) -> (i32, i32) {
    %c0_i32 = arith.constant 0 : i32
    %c0_i32_0 = arith.constant 0 : i32
    %c0_i32_1 = arith.constant 0 : i32
    return %c0_i32, %c0_i32_0 : i32, i32
  }
  func.func @transform_4(%arg0: i32, %arg1: i32) -> (i32, i32) {
    %c0_i32 = arith.constant 0 : i32
    %c0_i32_0 = arith.constant 0 : i32
    %c0_i32_1 = arith.constant 0 : i32
    return %c0_i32, %c0_i32_0 : i32, i32
  }
  func.func @transform_5(%arg0: i32, %arg1: i32) -> (i32, i32) {
    %c0_i32 = arith.constant 0 : i32
    %c0_i32_0 = arith.constant 0 : i32
    return %arg0, %c0_i32 : i32, i32
  }
}

</mosaic_0001>

<bundles_post_ra>
// kernel: tpu_custom_call.1
= control target key start
LH: loop header
LB: loop body
LE: loop exit
PB: predicated region body
PF: predicated region fallthrough
CT: control target
= control target key end

     0   :  { %10 = vsyncpa [#allocation4], 0  ;;  %s561_s0 = inlined_call_operand.hbm [shape: f32[16,32], index: 0, kind: input, shape index: {}]   ;;  %s562_s1 = inlined_call_operand.hbm [shape: bf16[32,128], index: 1, kind: input, shape index: {}]   ;;  %s563_s2 = inlined_call_operand.vmem [shape: f32[1,128], index: 2, kind: input, shape index: {}]   ;;  %s564_s3 = inlined_call_operand.hbm [shape: bf16[128,128], index: 3, kind: input, shape index: {}]   ;;  %s565_s4 = inlined_call_operand.vmem [shape: f32[1,128], index: 4, kind: input, shape index: {}]   ;;  %s566_s5 = inlined_call_operand.hbm [shape: f32[16,128], index: 5, kind: output, shape index: {}]  }
   0x1   :  { %11 = vsyncpa [#allocation7], 0 }
   0x2   :  { %12 = vsyncpa [#allocation5], 0  ;;  %s455_s18 = smov [#allocation6]   ;;  %s361_s22 = scalar_lea.hbm %s562_s1, 256 }
   0x3   :  { %s30_s19 = sshll.u32 %s455_s18, 4  ;;  %p362_p0 = scmp.ne.s32.totalorder %s562_s1, %s361_s22  ;;  %s31_s19 = int_to_ptr.vmem [resolvable:$true] %s30_s19 }
   0x4   :  { %p365_p1 = scmp.lt.u32.totalorder %s361_s22, %s562_s1 }
   0x6   :  { %p367_p2 = pnand %p365_p1, %p362_p0 }
   0x8   :  { %370 = shalt.err (!%p367_p2)
}
   0x9   :  { %s371_s27 = scalar_lea.vmem %s31_s19, 256  ;;  %p376_p4 = scmp.lt.s32.totalorder %s31_s19, %s31_s19 }
   0xa   :  { %p372_p3 = scmp.ne.s32.totalorder %s31_s19, %s371_s27  ;;  %p377_p5 = scmp.lt.s32.totalorder %s371_s27, %s371_s27 }
   0xc   :  { %p378_p6 = por %p377_p5, %p376_p4 }
   0xe   :  { %p379_p7 = pnand %p378_p6, %p372_p3 }
  0x10   :  { %382 = shalt.err (!%p379_p7)
}
  0x11   :  { %s456_s28 = smov 64   ;;  %s457_s29 = smov 4  }
  0x12   :  { %36 = dma.hbm_to_vmem [thread:$0]  %s562_s1, 256, %s31_s19, [#allocation7], %s456_s28, %s456_s28, %s457_s29  }
  0x13   :  { %s458_s7 = smov [#allocation3]   ;;  %s383_s11 = scalar_lea.hbm %s561_s0, 256 }
  0x14   :  { %s18_s8 = sshll.u32 %s458_s7, 4  ;;  %p384_p8 = scmp.ne.s32.totalorder %s561_s0, %s383_s11  ;;  %s19_s8 = int_to_ptr.vmem [resolvable:$true] %s18_s8 }
  0x15   :  { %p387_p9 = scmp.lt.u32.totalorder %s383_s11, %s561_s0 }
  0x17   :  { %p389_p10 = pnand %p387_p9, %p384_p8 }
  0x19   :  { %392 = shalt.err (!%p389_p10)
}
  0x1a   :  { %s393_s16 = scalar_lea.vmem %s19_s8, 256  ;;  %p398_p12 = scmp.lt.s32.totalorder %s19_s8, %s19_s8 }
  0x1b   :  { %p394_p11 = scmp.ne.s32.totalorder %s19_s8, %s393_s16  ;;  %p399_p13 = scmp.lt.s32.totalorder %s393_s16, %s393_s16 }
  0x1d   :  { %p400_p0 = por %p399_p13, %p398_p12 }
  0x1f   :  { %p401_p1 = pnand %p400_p0, %p394_p11 }
  0x21   :  { %404 = shalt.err (!%p401_p1)
}
  0x22   :  { %s459_s1 = smov 128   ;;  %s460_s17 = smov 8  }
  0x23   :  { %24 = dma.hbm_to_vmem [thread:$0]  %s561_s0, 256, %s19_s8, [#allocation4], %s459_s1, %s459_s1, %s460_s17  }
  0x24   :  { %s461_s20 = smov [#allocation8]   ;;  %s405_s24 = scalar_lea.hbm %s564_s3, 1024 }
  0x25   :  { %s44_s21 = sshll.u32 %s461_s20, 4  ;;  %p406_p2 = scmp.ne.s32.totalorder %s564_s3, %s405_s24  ;;  %s45_s21 = int_to_ptr.vmem [resolvable:$true] %s44_s21 }
  0x26   :  { %p409_p3 = scmp.lt.u32.totalorder %s405_s24, %s564_s3 }
  0x28   :  { %p411_p4 = pnand %p409_p3, %p406_p2 }
  0x2a   :  { %414 = shalt.err (!%p411_p4)
}
  0x2b   :  { %s415_s6 = scalar_lea.vmem %s45_s21, 1024  ;;  %p420_p6 = scmp.lt.s32.totalorder %s45_s21, %s45_s21 }
  0x2c   :  { %p416_p5 = scmp.ne.s32.totalorder %s45_s21, %s415_s6  ;;  %p421_p7 = scmp.lt.s32.totalorder %s415_s6, %s415_s6 }
  0x2e   :  { %p422_p8 = por %p421_p7, %p420_p6 }
  0x30   :  { %p423_p9 = pnand %p422_p8, %p416_p5 }
  0x32   :  { %426 = shalt.err (!%p423_p9)
}
  0x33   :  { %50 = dma.hbm_to_vmem [thread:$0]  %s564_s3, 1024, %s45_s21, [#allocation7], %s456_s28, %s456_s28, %s457_s29  }
  0x34   :  { %449 = dma.done.wait [#allocation4], 256  }
  0x35   :  { %450 = vsyncadd [#allocation4], 4294967040 }
  0x36   :  { %451 = dma.done.wait [#allocation7], 1280  }
  0x37   :  { %452 = vsyncadd [#allocation7], 4294966016  ;;  %v462_v0 = vmov 0.0   ;;  %vm463_vm0 = vmmov 0   ;;  %v351_v1 = vld [vmem:[#allocation6] sm:$0xff]   ;;  %v352_v2 = vld [vmem:[#allocation6 + $0x8] sm:$0xff]  }
  0x38   :  { %313 = vmatprep.subr.bf16.mxu0 %v462_v0  ;;  %317 = vmatprep.mubr.msk.bf16.mxu0 %vm463_vm0, %v462_v0  ;;  %v71_v3 = vld [vmem:[#allocation3] sm:$0xff]  ;;  %v72_v4 = vld [vmem:[#allocation3 + $0x8] sm:$0xff]  ;;  %vm90_vm1 = vcmask 261120   ;;  %v355_v8 = vld [vmem:[#allocation8 + $0x10] sm:$0xff]   ;;  %s464_s9 = smov [#allocation9]  }
  0x39   :  { %321 = vmatprep.subr.bf16.mxu1 %v462_v0  ;;  %337 = vmatprep.mubr.msk.bf16.mxu1 %vm463_vm0, %v462_v0  ;;  %v353_v5 = vld [vmem:[#allocation8] sm:$0xff]   ;;  %v73_v6 = vpack.c.bf16 %v72_v4, %v71_v3  ;;  %v354_v7 = vld [vmem:[#allocation8 + $0x8] sm:$0xff]   ;;  %v356_v9 = vld [vmem:[#allocation8 + $0x18] sm:$0xff]   ;;  %s275_s10 = sshll.u32 %s464_s9, 4  ;;  %s276_s10 = int_to_ptr.vmem [resolvable:$true] %s275_s10 }
  0x3a   :  { %314 = vmatpush3.bf16.msra.mxu0 %v351_v1  ;;  %322 = vmatpush3.bf16.msra.mxu1 %v353_v5  ;;  %v357_v10 = vld [vmem:[#allocation8 + $0x20] sm:$0xff]   ;;  %v358_v11 = vld [vmem:[#allocation8 + $0x28] sm:$0xff]   ;;  %v359_v12 = vld [vmem:[#allocation8 + $0x30] sm:$0xff]   ;;  %p432_p11 = scmp.lt.s32.totalorder %s276_s10, %s276_s10 }
  0x3b   :  { %315 = vmatprep.subr.bf16.mxu0 %v462_v0  ;;  %323 = vmatprep.subr.bf16.mxu1 %v462_v0  ;;  %v360_v13 = vld [vmem:[#allocation8 + $0x38] sm:$0xff]   ;;  %v291_v14 = vld [vmem:[%s563_s2] ss:$0 sm:$0xff]  ;;  %s427_s2 = scalar_lea.vmem %s276_s10, 256 }
  0x3c   :  { %v292_v24 = vld [vmem:[%s565_s4] ss:$0 sm:$0xff]  ;;  %p428_p10 = scmp.ne.s32.totalorder %s276_s10, %s427_s2  ;;  %p433_p12 = scmp.lt.s32.totalorder %s427_s2, %s427_s2 }
  0x3e   :  { %316 = vmatpush3.bf16.msra.mxu0 %v352_v2  ;;  %324 = vmatpush3.bf16.msra.mxu1 %v354_v7  ;;  %p434_p13 = por %p433_p12, %p432_p11 }
  0x3f   :  { %325 = vmatprep.subr.bf16.mxu1 %v462_v0 }
  0x40   :  { %p435_p0 = pnand %p434_p13, %p428_p10 }
  0x41   :  { %318 = vmatmul.mubr.msk.bf16.vlgmr.msra.gmra.mrb[0].mxu0 %vm90_vm1, %v73_v6 }
  0x42   :  { %326 = vmatpush3.bf16.msra.mxu1 %v355_v8 }
  0x43   :  { %327 = vmatprep.subr.bf16.mxu1 %v462_v0 }
  0x46   :  { %328 = vmatpush3.bf16.msra.mxu1 %v356_v9 }
  0x47   :  { %329 = vmatprep.subr.bf16.mxu1 %v462_v0 }
  0x4a   :  { %330 = vmatpush3.bf16.msra.mxu1 %v357_v10 }
  0x4b   :  { %331 = vmatprep.subr.bf16.mxu1 %v462_v0 }
  0x4e   :  { %332 = vmatpush3.bf16.msra.mxu1 %v358_v11 }
  0x4f   :  { %333 = vmatprep.subr.bf16.mxu1 %v462_v0 }
  0x52   :  { %334 = vmatpush3.bf16.msra.mxu1 %v359_v12 }
  0x53   :  { %335 = vmatprep.subr.bf16.mxu1 %v462_v0 }
  0x56   :  { %336 = vmatpush3.bf16.msra.mxu1 %v360_v13 }
 0x114   :  { %v128_v15 = vpop.f32.mrb[0].mxu0 }
 0x115   :  { %v151_v16 = vadd.f32 %v291_v14, %v128_v15  ;;  %v319_v17 = vpop.f32.mrb[1].mxu0 }
 0x116   :  { %v131_v18 = vpop.f32.mrb[2].mxu0 }
 0x117   :  { %v152_v19 = vadd.f32 %v291_v14, %v131_v18  ;;  %v320_v20 = vpop.f32.mrb[3].mxu0  ;;  %v153_v21 = vmax.f32 %v151_v16, 0.0 }
 0x119   :  { %v154_v22 = vmax.f32 %v152_v19, 0.0 }
 0x11b   :  { %v155_v23 = vpack.c.bf16 %v154_v22, %v153_v21 }
 0x11d   :  { %338 = vmatmul.mubr.bf16.vlgmr.msra.gmra.mrb[0].mxu1 %v155_v23 }
 0x1f0   :  { %v261_v25 = vpop.f32.mrb[0].mxu1 }
 0x1f1   :  { %v262_v26 = vadd.f32 %v292_v24, %v261_v25  ;;  %v339_v27 = vpop.f32.mrb[1].mxu1 }
 0x1f2   :  { %v264_v28 = vpop.f32.mrb[2].mxu1 }
 0x1f3   :  { %268 = vst [vmem:[#allocation9] sm:$0xff] %v262_v26  ;;  %v265_v29 = vadd.f32 %v292_v24, %v264_v28  ;;  %v340_v30 = vpop.f32.mrb[3].mxu1 }
 0x1f5   :  { %269 = vst [vmem:[#allocation9 + $0x8] sm:$0xff] %v265_v29 }
 0x1f6   :  { %438 = shalt.err (!%p435_p0)
}
 0x1f7   :  { %s439_s12 = scalar_lea.hbm %s566_s5, 256 }
 0x1f8   :  { %p440_p1 = scmp.ne.s32.totalorder %s566_s5, %s439_s12  ;;  %p443_p2 = scmp.lt.u32.totalorder %s439_s12, %s566_s5 }
 0x1fa   :  { %p445_p3 = pnand %p443_p2, %p440_p1 }
 0x1fc   :  { %448 = shalt.err (!%p445_p3)
}
 0x1fd   :  { %281 = dma.vmem_to_hbm [thread:$0]  %s276_s10, 256, %s566_s5, [#allocation5], %s459_s1, %s459_s1, %s460_s17  }
 0x1fe   :  { %453 = dma.done.wait [#allocation5], 256  }
 0x1ff   :  { %454 = vsyncadd [#allocation5], 4294967040 }
 0x200   :  { %285 = vsyncpa [#allocation4], 1 }
 0x201   :  { %286 = vsyncpa [#allocation7], 1 }
 0x202   :  { %287 = vsyncpa [#allocation5], 1 }

</bundles_post_ra>
